<compile_context>
chip_gen: v5e
topology: v5e:2x2
jax: 0.10.0
libtpu: 0.0.40
codegen_flags: <defaults>
</compile_context>

<pallas_src>
import functools

import jax
import jax.numpy as jnp
from jax.experimental import pallas as pl
from jax.experimental.pallas import tpu as pltpu


def _channel_attention_kernel(x_ref, w1t_ref, b1_ref, w2t_ref, b2_ref,
                              att_ref, sum_acc, max_acc, *, inv_hw):
    # Grid = (samples, spatial); spatial is innermost and "arbitrary".
    s = pl.program_id(1)

    @pl.when(s == 0)
    def _init():
        sum_acc[...] = jnp.zeros_like(sum_acc)
        max_acc[...] = jnp.full_like(max_acc, -jnp.inf)

    x = x_ref[...]                                           # (TN, C, THW), input dtype
    # Sum accumulates in f32 without materializing a full f32 copy of the
    # block; max is exact in the input dtype (cast only the (TN, C) result).
    sum_acc[...] += jnp.sum(x, axis=-1, dtype=jnp.float32)
    max_acc[...] = jnp.maximum(max_acc[...],
                               jnp.max(x, axis=-1).astype(jnp.float32))

    @pl.when(s == pl.num_programs(1) - 1)
    def _finalize():
        # add_pooling = avg_pool + max_pool, then the shared 1x1-conv MLP.
        pooled = sum_acc[...] * inv_hw + max_acc[...]        # (TN, C) f32
        h = jnp.dot(pooled, w1t_ref[...],
                    preferred_element_type=jnp.float32) + b1_ref[...]
        h = jnp.maximum(h, 0.0)                              # ReLU
        att = jnp.dot(h, w2t_ref[...],
                      preferred_element_type=jnp.float32) + b2_ref[...]
        att = jax.nn.sigmoid(att)                            # (TN, C)
        att_ref[...] = att[:, None, :].astype(att_ref.dtype)  # (TN, 1, C)


def _vmem_capacity_bytes():
    """Physical VMEM of the current part; conservative v7x fallback."""
    try:
        return int(pltpu.get_tpu_info().vmem_capacity_bytes)
    except Exception:
        return 64 << 20


def _select_tiles(n, c, hw, itemsize, vmem_cap, force_thw=None):
    """Pick (TN samples, THW spatial) per grid step.

    Accounts for sublane padding of C and 2x double buffering; prefers >=4
    (even) steps on the parallel sample axis for v7x megacore balance."""
    sub = 8 * max(1, 4 // itemsize)          # f32 -> 8, bf16 -> 16, int8 -> 32
    c_pad = -(-c // sub) * sub
    # Per-step x-block target: larger on big-VMEM / high-BW parts, always
    # leaving room for the double buffer (2x) plus weights/out/scratch.
    target = int(min(16 << 20, max(4 << 20, vmem_cap // 8)))

    if force_thw is not None:
        thw = force_thw
    else:
        # Lane-dim rule: spatial tile must be a multiple of 128 or the full HW.
        divs_hw = [d for d in range(1, hw + 1)
                   if hw % d == 0 and (d == hw or d % 128 == 0)]
        fits_hw = [d for d in divs_hw if c_pad * d * itemsize <= target]
        thw = max(fits_hw) if fits_hw else min(divs_hw)

    per_sample = c_pad * thw * itemsize
    divs_n = [d for d in range(1, n + 1) if n % d == 0]
    fits_n = [d for d in divs_n if d * per_sample <= target] or [1]
    tn = 1
    for pred in (lambda d: n // d >= 4 and (n // d) % 2 == 0,   # >=2 steps / TC
                 lambda d: n // d >= 2,
                 lambda d: True):
        pool = [d for d in fits_n if pred(d)]
        if pool:
            tn = max(pool)
            break
    return tn, thw, tn * per_sample


def channel_attention_map(x, w1, b1, w2, b2, *, spatial_tile=None):
    """Compact per-sample channel attention, shape (B, T, C).

    x: (B, T, C, H, W). w1: (hidden, C), b1: (hidden,), w2: (C, hidden), b2: (C,)
    (the 1x1 Conv2d weights with the trailing (1,1) spatial dims squeezed)."""
    B, T, C, H, W = x.shape
    N, HW = B * T, H * W
    hidden = w1.shape[0]
    C_out = w2.shape[0]
    assert C_out == C, "out_channel must equal C for the reshape/expand to work"

    itemsize = jnp.dtype(x.dtype).itemsize
    vmem_cap = _vmem_capacity_bytes()
    if spatial_tile is not None:
        assert HW % spatial_tile == 0 and (spatial_tile % 128 == 0 or spatial_tile == HW)
    TN, THW, block_bytes = _select_tiles(N, C, HW, itemsize, vmem_cap,
                                         force_thw=spatial_tile)
    assert N % TN == 0 and HW % THW == 0
    grid = (N // TN, HW // THW)

    x_flat = x.reshape(N, C, HW)
    # Pre-transpose weights (no in-kernel transpose); tiny, keep f32 for the MXU.
    w1t = jnp.transpose(w1).astype(jnp.float32)     # (C, hidden):  pooled @ w1t
    w2t = jnp.transpose(w2).astype(jnp.float32)     # (hidden, C):  h @ w2t
    b1r = b1.reshape(1, hidden).astype(jnp.float32)
    b2r = b2.reshape(1, C_out).astype(jnp.float32)

    # Honest VMEM budget: double-buffered x block dominates; weights, the
    # (TN,1,C) output and the two (TN,C) scratch accumulators fit in the slack.
    need = 2 * block_bytes + (4 << 20)
    vmem_limit = int(min(max(need, 32 << 20), (vmem_cap * 3) // 4))
    vmem_limit = max(vmem_limit, need)

    kernel = functools.partial(_channel_attention_kernel, inv_hw=1.0 / HW)

    att = pl.pallas_call(
        kernel,
        out_shape=jax.ShapeDtypeStruct((N, 1, C_out), x.dtype),
        grid_spec=pltpu.PrefetchScalarGridSpec(
            num_scalar_prefetch=0,
            grid=grid,
            in_specs=[
                pl.BlockSpec((TN, C, THW), lambda n, s: (n, 0, s)),
                pl.BlockSpec((C, hidden), lambda n, s: (0, 0)),
                pl.BlockSpec((1, hidden), lambda n, s: (0, 0)),
                pl.BlockSpec((hidden, C_out), lambda n, s: (0, 0)),
                pl.BlockSpec((1, C_out), lambda n, s: (0, 0)),
            ],
            # Same output block across all spatial steps -> stays resident;
            # written once on the last spatial step.
            out_specs=pl.BlockSpec((TN, 1, C_out), lambda n, s: (n, 0, 0)),
            scratch_shapes=[
                pltpu.VMEM((TN, C), jnp.float32),   # running spatial sum
                pltpu.VMEM((TN, C), jnp.float32),   # running spatial max
            ],
        ),
        compiler_params=pltpu.CompilerParams(
            dimension_semantics=("parallel", "arbitrary"),
            vmem_limit_bytes=vmem_limit,
        ),
    )(x_flat, w1t, b1r, w2t, b2r)

    return att.reshape(B, T, C_out)


def channel_attention(x, w1, b1, w2, b2, *, spatial_tile=None):
    """PyTorch ChannelAttention.forward: attention map expanded to (B,T,C,H,W).

    The expand is a lazy broadcast (PyTorch's .expand is a zero-copy view too);
    under jit it fuses into the consumer, so the kernel's compact (N,C) output
    keeps HBM traffic low.  Callers that immediately multiply by x should use
    channel_attention_map() and broadcast themselves inside their jit."""
    B, T, C, H, W = x.shape
    att = channel_attention_map(x, w1, b1, w2, b2, spatial_tile=spatial_tile)
    return jnp.broadcast_to(att.reshape(B, T, C, 1, 1), (B, T, C, H, W))


def reference(x, w1, b1, w2, b2):
    """Pure-JAX reference mirroring the PyTorch forward."""
    B, T, C, H, W = x.shape
    xr = x.reshape(-1, C, H, W)
    pooled = xr.mean(axis=(2, 3)) + xr.max(axis=(2, 3))           # (N, C)
    h = jnp.maximum(pooled @ w1.T + b1, 0.0)                      # (N, hidden)
    att = jax.nn.sigmoid(h @ w2.T + b2)                           # (N, C)
    att = att.reshape(B, T, C, 1, 1)
    return jnp.broadcast_to(att, (B, T, C, H, W))


if __name__ == "__main__":
    # Small shapes consistent with the module (in_channel == out_channel == C).
    B, T, C, H, W = 2, 8, 4, 16, 16
    hidden = 2

    key = jax.random.PRNGKey(0)
    kx, k1, k2, k3, k4 = jax.random.split(key, 5)

    x = jax.random.normal(kx, (B, T, C, H, W), dtype=jnp.float32)

    # Deterministic parameter init (Conv2d 1x1 weights squeezed to 2-D).
    bound1 = 1.0 / (C ** 0.5)
    w1 = jax.random.uniform(k1, (hidden, C), jnp.float32, -bound1, bound1)
    b1 = jax.random.uniform(k2, (hidden,), jnp.float32, -bound1, bound1)
    bound2 = 1.0 / (hidden ** 0.5)
    w2 = jax.random.uniform(k3, (C, hidden), jnp.float32, -bound2, bound2)
    b2 = jax.random.uniform(k4, (C,), jnp.float32, -bound2, bound2)

    ref = reference(x, w1, b1, w2, b2)

    # 1) Default tiling (single spatial step for this small image).
    out = jax.block_until_ready(channel_attention(x, w1, b1, w2, b2))
    assert out.shape == (B, T, C, H, W)
    assert jnp.allclose(out, ref, atol=1e-5, rtol=1e-5), "mismatch (default tiling)"

    # 2) Forced spatial tiling (HW=256 split into 2 steps of 128) to exercise
    #    the running sum/max accumulator path used for large images.
    out_tiled = jax.block_until_ready(
        channel_attention(x, w1, b1, w2, b2, spatial_tile=128))
    assert jnp.allclose(out_tiled, ref, atol=1e-5, rtol=1e-5), "mismatch (hw tiling)"

    print("KERNEL_OK")
</pallas_src>

<mosaic_0001>
module attributes {stable_mosaic.version = 11 : i64} {
  func.func @_channel_attention_kernel(%arg0: i32, %arg1: i32, %arg2: memref<4x4x256xf32, #tpu.memory_space<vmem>>, %arg3: memref<4x2xf32, #tpu.memory_space<vmem>>, %arg4: memref<1x2xf32, #tpu.memory_space<vmem>>, %arg5: memref<2x4xf32, #tpu.memory_space<vmem>>, %arg6: memref<1x4xf32, #tpu.memory_space<vmem>>, %arg7: memref<4x1x4xf32, #tpu.memory_space<vmem>>, %arg8: memref<4x4xf32, #tpu.memory_space<vmem>>, %arg9: memref<4x4xf32, #tpu.memory_space<vmem>>) attributes {dimension_semantics = [#tpu.dimension_semantics<parallel>, #tpu.dimension_semantics<arbitrary>], iteration_bounds = array<i64: 4, 1>, scalar_prefetch = 0 : i64, scratch_operands = 2 : i64, tpu.core_type = #tpu.core_type<tc>, window_params = [{transform_indices = @transform_0, window_bounds = array<i64: 4, 4, 256>}, {pipeline_mode = #tpu.pipeline_mode<synchronous>, transform_indices = @transform_1, window_bounds = array<i64: 4, 2>}, {pipeline_mode = #tpu.pipeline_mode<synchronous>, transform_indices = @transform_2, window_bounds = array<i64: 1, 2>}, {pipeline_mode = #tpu.pipeline_mode<synchronous>, transform_indices = @transform_3, window_bounds = array<i64: 2, 4>}, {pipeline_mode = #tpu.pipeline_mode<synchronous>, transform_indices = @transform_4, window_bounds = array<i64: 1, 4>}, {transform_indices = @transform_5, window_bounds = array<i64: 4, 1, 4>}]} {
    %c0_i32 = arith.constant 0 : i32
    %0 = arith.cmpi eq, %arg1, %c0_i32 : i32
    %1 = arith.extui %0 : i1 to i32
    %c0_i32_0 = arith.constant 0 : i32
    %2 = arith.cmpi ne, %1, %c0_i32_0 : i32
    scf.if %2 {
      %cst_14 = arith.constant 0.000000e+00 : f32
      %15 = vector.broadcast %cst_14 : f32 to vector<4x4xf32>
      %c0_15 = arith.constant 0 : index
      %c0_16 = arith.constant 0 : index
      %16 = vector.load %arg8[%c0_15, %c0_16] : memref<4x4xf32, #tpu.memory_space<vmem>>, vector<4x4xf32>
      tpu.vector_store %arg8[%c0_15, %c0_16], %15 {strides = array<i32>} : memref<4x4xf32, #tpu.memory_space<vmem>>, vector<4x4xf32>,
      %cst_17 = arith.constant 0xFF800000 : f32
      %17 = vector.broadcast %cst_17 : f32 to vector<4x4xf32>
      %c0_18 = arith.constant 0 : index
      %c0_19 = arith.constant 0 : index
      %18 = vector.load %arg9[%c0_18, %c0_19] : memref<4x4xf32, #tpu.memory_space<vmem>>, vector<4x4xf32>
      tpu.vector_store %arg9[%c0_18, %c0_19], %17 {strides = array<i32>} : memref<4x4xf32, #tpu.memory_space<vmem>>, vector<4x4xf32>,
    } else {
    }
    %c0 = arith.constant 0 : index
    %c0_1 = arith.constant 0 : index
    %c0_2 = arith.constant 0 : index
    %3 = vector.load %arg2[%c0, %c0_1, %c0_2] : memref<4x4x256xf32, #tpu.memory_space<vmem>>, vector<4x4x256xf32>
    %c0_3 = arith.constant 0 : index
    %c0_4 = arith.constant 0 : index
    %4 = vector.load %arg8[%c0_3, %c0_4] : memref<4x4xf32, #tpu.memory_space<vmem>>, vector<4x4xf32>
    %cst = arith.constant dense<0.000000e+00> : vector<4x4xf32>
    %5 = vector.multi_reduction <add>, %3, %cst [2] : vector<4x4x256xf32> to vector<4x4xf32>
    %6 = arith.addf %4, %5 : vector<4x4xf32>
    %c0_5 = arith.constant 0 : index
    %c0_6 = arith.constant 0 : index
    %7 = vector.load %arg8[%c0_5, %c0_6] : memref<4x4xf32, #tpu.memory_space<vmem>>, vector<4x4xf32>
    tpu.vector_store %arg8[%c0_5, %c0_6], %6 {strides = array<i32>} : memref<4x4xf32, #tpu.memory_space<vmem>>, vector<4x4xf32>,
    %c0_7 = arith.constant 0 : index
    %c0_8 = arith.constant 0 : index
    %8 = vector.load %arg9[%c0_7, %c0_8] : memref<4x4xf32, #tpu.memory_space<vmem>>, vector<4x4xf32>
    %cst_9 = arith.constant dense<0xFF800000> : vector<4x4xf32>
    %9 = vector.multi_reduction <maximumf>, %3, %cst_9 [2] : vector<4x4x256xf32> to vector<4x4xf32>
    %10 = arith.maximumf %8, %9 : vector<4x4xf32>
    %c0_10 = arith.constant 0 : index
    %c0_11 = arith.constant 0 : index
    %11 = vector.load %arg9[%c0_10, %c0_11] : memref<4x4xf32, #tpu.memory_space<vmem>>, vector<4x4xf32>
    tpu.vector_store %arg9[%c0_10, %c0_11], %10 {strides = array<i32>} : memref<4x4xf32, #tpu.memory_space<vmem>>, vector<4x4xf32>,
    %c0_i32_12 = arith.constant 0 : i32
    %12 = arith.cmpi eq, %arg1, %c0_i32_12 : i32
    %13 = arith.extui %12 : i1 to i32
    %c0_i32_13 = arith.constant 0 : i32
    %14 = arith.cmpi ne, %13, %c0_i32_13 : i32
    scf.if %14 {
      %c0_14 = arith.constant 0 : index
      %c0_15 = arith.constant 0 : index
      %15 = vector.load %arg8[%c0_14, %c0_15] : memref<4x4xf32, #tpu.memory_space<vmem>>, vector<4x4xf32>
      %cst_16 = arith.constant 3.906250e-03 : f32
      %16 = vector.broadcast %cst_16 : f32 to vector<4x4xf32>
      %17 = arith.mulf %15, %16 : vector<4x4xf32>
      %c0_17 = arith.constant 0 : index
      %c0_18 = arith.constant 0 : index
      %18 = vector.load %arg9[%c0_17, %c0_18] : memref<4x4xf32, #tpu.memory_space<vmem>>, vector<4x4xf32>
      %19 = arith.addf %17, %18 : vector<4x4xf32>
      %c0_19 = arith.constant 0 : index
      %c0_20 = arith.constant 0 : index
      %20 = vector.load %arg3[%c0_19, %c0_20] : memref<4x2xf32, #tpu.memory_space<vmem>>, vector<4x2xf32>
      %cst_21 = arith.constant dense<0.000000e+00> : vector<4x2xf32>
      %21 = tpu.matmul %19, %20, %cst_21 {dimension_numbers = #tpu.dot_dimension_numbers<[1], [0], [0], [1], [0, 0, 1, 1], [], []>} : vector<4x4xf32>, vector<4x2xf32>, vector<4x2xf32> -> vector<4x2xf32>
      %c0_22 = arith.constant 0 : index
      %c0_23 = arith.constant 0 : index
      %22 = vector.load %arg4[%c0_22, %c0_23] : memref<1x2xf32, #tpu.memory_space<vmem>>, vector<1x2xf32>
      %23 = vector.broadcast %22 : vector<1x2xf32> to vector<4x2xf32>
      %24 = arith.addf %21, %23 : vector<4x2xf32>
      %cst_24 = arith.constant 0.000000e+00 : f32
      %25 = vector.broadcast %cst_24 : f32 to vector<4x2xf32>
      %26 = arith.maximumf %24, %25 : vector<4x2xf32>
      %c0_25 = arith.constant 0 : index
      %c0_26 = arith.constant 0 : index
      %27 = vector.load %arg5[%c0_25, %c0_26] : memref<2x4xf32, #tpu.memory_space<vmem>>, vector<2x4xf32>
      %cst_27 = arith.constant dense<0.000000e+00> : vector<4x4xf32>
      %28 = tpu.matmul %26, %27, %cst_27 {dimension_numbers = #tpu.dot_dimension_numbers<[1], [0], [0], [1], [0, 0, 1, 1], [], []>} : vector<4x2xf32>, vector<2x4xf32>, vector<4x4xf32> -> vector<4x4xf32>
      %c0_28 = arith.constant 0 : index
      %c0_29 = arith.constant 0 : index
      %29 = vector.load %arg6[%c0_28, %c0_29] : memref<1x4xf32, #tpu.memory_space<vmem>>, vector<1x4xf32>
      %30 = vector.broadcast %29 : vector<1x4xf32> to vector<4x4xf32>
      %31 = arith.addf %28, %30 : vector<4x4xf32>
      %32 = arith.negf %31 : vector<4x4xf32>
      %33 = math.exp %32 : vector<4x4xf32>
      %cst_30 = arith.constant 1.000000e+00 : f32
      %34 = vector.broadcast %cst_30 : f32 to vector<4x4xf32>
      %35 = arith.addf %34, %33 : vector<4x4xf32>
      %36 = arith.divf %34, %35 : vector<4x4xf32>
      %37 = vector.shape_cast %36 : vector<4x4xf32> to vector<4x1x4xf32>
      %c0_31 = arith.constant 0 : index
      %c0_32 = arith.constant 0 : index
      %c0_33 = arith.constant 0 : index
      %38 = vector.load %arg7[%c0_31, %c0_32, %c0_33] : memref<4x1x4xf32, #tpu.memory_space<vmem>>, vector<4x1x4xf32>
      tpu.vector_store %arg7[%c0_31, %c0_32, %c0_33], %37 {strides = array<i32>} : memref<4x1x4xf32, #tpu.memory_space<vmem>>, vector<4x1x4xf32>,
    } else {
    }
    return
  }
  func.func @transform_0(%arg0: i32, %arg1: i32) -> (i32, i32, i32) {
    %c0_i32 = arith.constant 0 : i32
    %c0_i32_0 = arith.constant 0 : i32
    return %arg0, %c0_i32, %arg1 : i32, i32, i32
  }
  func.func @transform_1(%arg0: i32, %arg1: i32) -> (i32, i32) {
    %c0_i32 = arith.constant 0 : i32
    %c0_i32_0 = arith.constant 0 : i32
    %c0_i32_1 = arith.constant 0 : i32
    return %c0_i32, %c0_i32_0 : i32, i32
  }
  func.func @transform_2(%arg0: i32, %arg1: i32) -> (i32, i32) {
    %c0_i32 = arith.constant 0 : i32
    %c0_i32_0 = arith.constant 0 : i32
    %c0_i32_1 = arith.constant 0 : i32
    return %c0_i32, %c0_i32_0 : i32, i32
  }
  func.func @transform_3(%arg0: i32, %arg1: i32) -> (i32, i32) {
    %c0_i32 = arith.constant 0 : i32
    %c0_i32_0 = arith.constant 0 : i32
    %c0_i32_1 = arith.constant 0 : i32
    return %c0_i32, %c0_i32_0 : i32, i32
  }
  func.func @transform_4(%arg0: i32, %arg1: i32) -> (i32, i32) {
    %c0_i32 = arith.constant 0 : i32
    %c0_i32_0 = arith.constant 0 : i32
    %c0_i32_1 = arith.constant 0 : i32
    return %c0_i32, %c0_i32_0 : i32, i32
  }
  func.func @transform_5(%arg0: i32, %arg1: i32) -> (i32, i32, i32) {
    %c0_i32 = arith.constant 0 : i32
    %c0_i32_0 = arith.constant 0 : i32
    %c0_i32_1 = arith.constant 0 : i32
    return %arg0, %c0_i32, %c0_i32_0 : i32, i32, i32
  }
}

</mosaic_0001>

<bundles_post_ra>
// kernel: tpu_custom_call.1
= control target key start
LH: loop header
LB: loop body
LE: loop exit
PB: predicated region body
PF: predicated region fallthrough
CT: control target
= control target key end

     0   :  { %10 = vsyncpa [#allocation5], 0  ;;  %s907_s0 = inlined_call_operand.hbm [shape: f32[16,4,256], index: 0, kind: input, shape index: {}]   ;;  %s908_s1 = inlined_call_operand.vmem [shape: f32[4,2], index: 1, kind: input, shape index: {}]   ;;  %s909_s2 = inlined_call_operand.vmem [shape: f32[1,2], index: 2, kind: input, shape index: {}]   ;;  %s910_s3 = inlined_call_operand.vmem [shape: f32[2,4], index: 3, kind: input, shape index: {}]   ;;  %s911_s4 = inlined_call_operand.vmem [shape: f32[1,4], index: 4, kind: input, shape index: {}]   ;;  %s912_s5 = inlined_call_operand.vmem [shape: f32[16,1,4], index: 5, kind: output, shape index: {}]  }
   0x1   :  { %12 = vsyncpa [#allocation5 + $0x1], 0  ;;  %s781_s18 = smov 0   ;;  %s783_s19 = smov 0  }
   0x2   :  { %s785_s20 = smov 0   ;;  %s787_s21 = smov 0  }
   0x3   :  { %s789_s22 = smov 0   ;;  %s791_s23 = smov 0  }
   0x4 LB: > { %s580_s24 = sadd.s32 4294967295, %s745_s23   ;;  %s30_s25 = sadd.s32 1, %s741_s22  ;;  %s745_s23 = sphi %s791_s23, %s18_s23   ;;  %s741_s22 = sphi %s789_s22, %s919_s22   ;;  %s737_s21 = sphi %s787_s21, %s918_s21   ;;  %s733_s20 = sphi %s785_s20, %s917_s20   ;;  %s729_s19 = sphi %s783_s19, %s916_s19   ;;  %s725_s18 = sphi %s781_s18, %s915_s18  }
   0x5   : > { %p32_p0 = scmp.ge.s32.totalorder %s30_s25, 4  ;;  %s39_s26 = sadd.s32 1, %s733_s20 }
   0x6   : > { %p46_p1 = scmp.ne.s32.totalorder %s733_s20, %s729_s19  ;;  %p47_p2 = scmp.eq.s32.totalorder %s745_s23, 0 }
   0x7   : > { %s921_s25 = smov (%p32_p0, %s30_s25), 0  ;;  %p52_p4 = scmp.ne.s32.totalorder %s729_s19, %s725_s18 }
   0x8   : > { %p817_p3 = por %p47_p2, %p46_p1  ;;  %s34_s28 = ssub.s32 %s741_s22, %s921_s25 }
   0x9   : > { %p53_p5 = scmp.eq.s32.totalorder %s580_s24, 0  ;;  %p37_p6 = scmp.eq.s32.totalorder %s34_s28, 0 }
   0xa   : > { %p606_p8 = scmp.lt.s32.totalorder %s745_s23, 4  ;;  %s198_s6 = sand.u32 1, %s733_s20  }
   0xb   : > { %p824_p7 = por %p53_p5, %p52_p4  ;;  %s599_s7 = sshll.u32 %s741_s22, 5 }
   0xc   : > { %s830_s30 = scalar_select %p37_p6, %s733_s20, %s39_s26  }
   0xd   : > { %s584_s8 = sshll.u32 %s198_s6, 5  ;;  %s210_s11 = scalar_lea.hbm %s907_s0, %s599_s7 }
   0xe   : > { %s211_s12 = sshll.u32 %s210_s11, 4  ;;  %s202_s13 = scalar_lea.vmem [#allocation4], %s584_s8  ;;  %s212_s12 = int_to_ptr.hbm [resolvable:$true] %s211_s12 }
   0xf   : > { %s213_s14 = sshll.u32 %s202_s13, 4  ;;  %p603_p9 = pnand %p606_p8, %p817_p3  ;;  %s214_s14 = int_to_ptr.vmem [resolvable:$true] %s213_s14 }
  0x10   : > { %p588_p10 = scmp.ge.s32.totalorder %s745_s23, 1  ;;  %p221_p11 = scmp.lt.s32.totalorder %s745_s23, 5 }
  0x11   : > { %s199_s15 = scalar_lea.sflag [#allocation5], %s198_s6  ;;  %s747_s16 = smov 128  }
  0x12   : > { %s748_s17 = smov 8   ;;  %p222_p12 = pnand %p588_p10, %p221_p11 }
  0x13   : > { %605 = dma.hbm_to_vmem [thread:$0]  (!%p603_p9), %s212_s12, 512, %s214_s14, %s199_s15, %s747_s16, %s747_s16, %s748_s17  }
  0x14   : > { %225 = sbr.rel (%p222_p12) target bundleno = 478 (0x1de), region = 40  ;;  %s227_s18 = sand.u32 (!%p222_p12), 1, %s729_s19  }
  0x15   : > { %s589_s24 = sshll.u32 (!%p222_p12), %s227_s18, 5  ;;  %s228_s26 = scalar_lea.sflag (!%p222_p12), [#allocation5], %s227_s18 }
  0x16   : > { %s231_s28 = scalar_lea.vmem (!%p222_p12), [#allocation4], %s589_s24 }
  0x19   : > { %720 = dma.done.wait (%p824_p7), %s228_s26, 512  }
  0x1a   : > { %722 = vsyncadd (%p824_p7), %s228_s26, 4294966784  ;;  %v272_v0 = vld [vmem:[%s231_s28] sm:$0xff]  ;;  %v274_v1 = vld [vmem:[%s231_s28 + $0x10] sm:$0xff]  ;;  %vm304_vm0 = vcmask 1043456   ;;  %vm269_vm1 = vcmask 27648   ;;  %v749_v44 = vmov 0.0   ;;  %v329_v48 = vlaneseq }
  0x1b   : > { %v273_v2 = vld [vmem:[%s231_s28 + $0x8] sm:$0xff]  ;;  %281 = vst [vmem:[#allocation1] ss:$2 sm:$0xff] %v272_v0  ;;  %v275_v3 = vld [vmem:[%s231_s28 + $0x18] sm:$0xff]  ;;  %v750_v45 = vmov -inf   ;;  %vm335_vm2 = vcmask 1041409  }
  0x1c   : > { %289 = vst [vmem:[#allocation1 + $0x20] ss:$2 sm:$0xff] %v274_v1  ;;  %v410_v46 = vld [vmem:[%s908_s1] sm:$0xf]  ;;  %v330_v50 = vand.u32 127, %v329_v48  ;;  %vm337_vm3 = vcmask 1042434  }
  0x1d   : > { %285 = vst [vmem:[#allocation1 + $0x10] ss:$2 sm:$0xff] %v273_v2  ;;  %591 = vmatpush.msk.msra.mxu0 %vm304_vm0, %v410_v46  ;;  %vm339_vm4 = vcmask 1043459   ;;  %vm415_vm5 = vcmask 31744   ;;  %vm452_vm6 = vcmask 1041408   ;;  %vm448_vm7 = vcmask 15360  }
  0x1e   : > { %293 = vst [vmem:[#allocation1 + $0x30] ss:$2 sm:$0xff] %v275_v3  ;;  %s590_s12 = sshll.u32 %s737_s21, 2  ;;  %vm502_vm11 = vcmask 24576  }
  0x1f   : > { %270 = vst.msk [vmem:[#allocation2] sm:$0xf] %vm269_vm1, %v749_v44  ;;  %p261_p13 = scmp.lt.s32.totalorder %s590_s12, 15 }
  0x20   : > { %271 = vst.msk [vmem:[#allocation3] sm:$0xf] %vm269_vm1, %v750_v45 }
  0x21   : > { %s923_s12 = smov (!%p261_p13, %s590_s12), 15 }
  0x22   : > { %v282_v4 = vld.sshfl [vmem:[#allocation1] sm:$0xff pattern:$0x75316420]  ;;  %v283_v5 = vld.sshfl [vmem:[#allocation1 + $0x8] sm:$0xff pattern:$0x75316420]  ;;  %s263_s15 = scalar_lea.vmem %s912_s5, %s923_s12 }
  0x23   : > { %v305_v6 = vsel %vm304_vm0, %v282_v4, 0.0  ;;  %v306_v7 = vsel %vm304_vm0, %v283_v5, 0.0  ;;  %346 = vst [vmem:[#allocation1] ss:$2 sm:$0xff] %v272_v0 }
  0x24   : > { %v307_v8 = vadd.f32 %v306_v7, %v305_v6  ;;  %v290_v9 = vld.sshfl [vmem:[#allocation1 + $0x20] sm:$0xff pattern:$0x75316420]  ;;  %v291_v10 = vld.sshfl [vmem:[#allocation1 + $0x28] sm:$0xff pattern:$0x75316420] }
  0x25   : > { %v315_v11 = vsel %vm304_vm0, %v290_v9, 0.0  ;;  %v316_v12 = vsel %vm304_vm0, %v291_v10, 0.0  ;;  %354 = vst [vmem:[#allocation1 + $0x20] ss:$2 sm:$0xff] %v274_v1 }
  0x26   : > { %308 = vadd.xlane.f32.xlu0 %v307_v8  ;;  %v317_v13 = vadd.f32 %v316_v12, %v315_v11  ;;  %v286_v14 = vld.sshfl [vmem:[#allocation1 + $0x10] sm:$0xff pattern:$0x75316420]  ;;  %v287_v15 = vld.sshfl [vmem:[#allocation1 + $0x18] sm:$0xff pattern:$0x75316420] }
  0x27   : > { %v310_v16 = vsel %vm304_vm0, %v286_v14, 0.0  ;;  %v311_v17 = vsel %vm304_vm0, %v287_v15, 0.0  ;;  %350 = vst [vmem:[#allocation1 + $0x10] ss:$2 sm:$0xff] %v273_v2  ;;  %v276_v58 = vld [vmem:[#allocation2] sm:$0xf] }
  0x28   : > { %318 = vadd.xlane.f32.xlu1 %v317_v13  ;;  %v294_v18 = vld.sshfl [vmem:[#allocation1 + $0x30] sm:$0xff pattern:$0x75316420]  ;;  %v295_v19 = vld.sshfl [vmem:[#allocation1 + $0x38] sm:$0xff pattern:$0x75316420]  ;;  %v312_v24 = vadd.f32 %v311_v17, %v310_v16 }
  0x29   : > { %v320_v20 = vsel %vm304_vm0, %v294_v18, 0.0  ;;  %v321_v21 = vsel %vm304_vm0, %v295_v19, 0.0  ;;  %358 = vst [vmem:[#allocation1 + $0x30] ss:$2 sm:$0xff] %v275_v3  ;;  %v345_v6 = vld [vmem:[#allocation3] sm:$0xf] }
  0x2a   : > { %v347_v22 = vld.sshfl [vmem:[#allocation1] sm:$0xff pattern:$0x75316420]  ;;  %v348_v23 = vld.sshfl [vmem:[#allocation1 + $0x8] sm:$0xff pattern:$0x75316420]  ;;  %v322_v28 = vadd.f32 %v321_v21, %v320_v20 }
  0x2b   : > { %v369_v25 = vsel %vm304_vm0, %v347_v22, -inf  ;;  %v370_v26 = vsel %vm304_vm0, %v348_v23, -inf  ;;  %v443_v15 = vld [vmem:[%s910_s3] sm:$0x3] }
  0x2c   : > { %v371_v27 = vmax.f32 %v369_v25, %v370_v26  ;;  %v355_v29 = vld.sshfl [vmem:[#allocation1 + $0x20] sm:$0xff pattern:$0x75316420]  ;;  %v356_v30 = vld.sshfl [vmem:[#allocation1 + $0x28] sm:$0xff pattern:$0x75316420]  ;;  %593 = vmatpush.msk.msra.mxu1 %vm452_vm6, %v443_v15 }
  0x2d   : > { %v379_v35 = vsel %vm304_vm0, %v355_v29, -inf  ;;  %v380_v36 = vsel %vm304_vm0, %v356_v30, -inf  ;;  %v659_v16 = vld [vmem:[%s909_s2] ss:$0 sm:$0xff] }
  0x2e   : > { %372 = vmax.xlane.f32.xlu2 %v371_v27  ;;  %313 = vadd.xlane.f32.xlu0 %v312_v24  ;;  %v351_v31 = vld.sshfl [vmem:[#allocation1 + $0x10] sm:$0xff pattern:$0x75316420]  ;;  %v352_v32 = vld.sshfl [vmem:[#allocation1 + $0x18] sm:$0xff pattern:$0x75316420]  ;;  %v381_v42 = vmax.f32 %v379_v35, %v380_v36 }
  0x2f   : > { %v374_v33 = vsel %vm304_vm0, %v351_v31, -inf  ;;  %v375_v34 = vsel %vm304_vm0, %v352_v32, -inf  ;;  %v660_v20 = vld [vmem:[%s911_s4] ss:$0 sm:$0xff] }
  0x30   : > { %323 = vadd.xlane.f32.xlu1 %v322_v28  ;;  %v359_v37 = vld.sshfl [vmem:[#allocation1 + $0x30] sm:$0xff pattern:$0x75316420]  ;;  %v360_v38 = vld.sshfl [vmem:[#allocation1 + $0x38] sm:$0xff pattern:$0x75316420]  ;;  %v376_v41 = vmax.f32 %v374_v33, %v375_v34 }
  0x31   : > { %v384_v39 = vsel %vm304_vm0, %v359_v37, -inf  ;;  %v385_v40 = vsel %vm304_vm0, %v360_v38, -inf }
  0x32   : > { %v386_v43 = vmax.f32 %v384_v39, %v385_v40 }
  0x36   : > { %377 = vmax.xlane.f32.xlu2 %v376_v41  ;;  %382 = vmax.xlane.f32.xlu0 %v381_v42 }
  0x38   : > { %387 = vmax.xlane.f32.xlu1 %v386_v43 }
  0x99   : > { %v309_v47 = vpop.xlane.xlu0 %308 }
  0x9a   : > { %v331_v53 = vperm.slane %v309_v47, %v330_v50 }
  0x9b   : > { %v319_v49 = vpop.xlane.xlu1 %318 }
  0x9c   : > { %v333_v55 = vperm.slane %v319_v49, %v330_v50 }
  0xa1   : > { %v373_v51 = vpop.xlane.xlu2 %372  ;;  %v314_v52 = vpop.xlane.xlu0 %313 }
  0xa2   : > { %v332_v54 = vperm.slane %v314_v52, %v330_v50  ;;  %v393_v1 = vperm.slane %v373_v51, %v330_v50 }
  0xa3   : > { %v324_v56 = vpop.xlane.xlu1 %323 }
  0xa4   : > { %v336_v57 = vsel %vm335_vm2, %v332_v54, %v331_v53  ;;  %v334_v59 = vperm.slane %v324_v56, %v330_v50 }
  0xa5   : > { %v338_v60 = vsel %vm337_vm3, %v333_v55, %v336_v57 }
  0xa6   : > { %v340_v61 = vsel %vm339_vm4, %v334_v59, %v338_v60 }
  0xa7   : > { %v342_v62 = vadd.f32 %v340_v61, %v276_v58 }
  0xa9   : > { %344 = vst.msk [vmem:[#allocation2] sm:$0xf] %vm269_vm1, %v342_v62  ;;  %v378_v63 = vpop.xlane.xlu2 %377  ;;  %v383_v0 = vpop.xlane.xlu0 %382 }
  0xaa   : > { %v394_v2 = vperm.slane %v378_v63, %v330_v50  ;;  %v395_v3 = vperm.slane %v383_v0, %v330_v50 }
  0xab   : > { %v388_v4 = vpop.xlane.xlu1 %387 }
  0xac   : > { %v397_v5 = vsel %vm335_vm2, %v394_v2, %v393_v1  ;;  %v396_v7 = vperm.slane %v388_v4, %v330_v50 }
  0xad   : > { %v398_v8 = vsel %vm337_vm3, %v395_v3, %v397_v5 }
  0xae   : > { %v399_v9 = vsel %vm339_vm4, %v396_v7, %v398_v8 }
  0xaf   : > { %v401_v10 = vmax.f32 %v345_v6, %v399_v9 }
  0xb0   : > { %v406_v11 = vld [vmem:[#allocation2] sm:$0xf] }
  0xb1   : > { %402 = vst.msk [vmem:[#allocation3] sm:$0xf] %vm269_vm1, %v401_v10  ;;  %v407_v12 = vmul.f32 0.00390625, %v406_v11 }
  0xb8   : > { %v408_v13 = vld [vmem:[#allocation3] sm:$0xf] }
  0xb9   : > { %v409_v14 = vadd.f32 %v408_v13, %v407_v12 }
  0xbb   : > { %592 = vmatmul.msk.f32.vlgmr.msra.gmra.mxu0 %vm415_vm5, %v409_v14 }
 0x138   : > { %v439_v17 = vpop.f32.mrf.mxu0 }
 0x139   : > { %v440_v18 = vadd.f32 %v659_v16, %v439_v17 }
 0x13b   : > { %v442_v19 = vmax.f32 %v440_v18, 0.0 }
 0x13d   : > { %594 = vmatmul.msk.f32.vlgmr.msra.gmra.mxu1 %vm448_vm7, %v442_v19 }
 0x1ba   : > { %v473_v21 = vpop.f32.mrf.mxu1 }
 0x1bb   : > { %v474_v22 = vadd.f32 %v660_v20, %v473_v21 }
 0x1bd   : > { %v595_v23 = vmul.f32 -1.442695, %v474_v22 }
 0x1bf   : > { %661 = vpow2.f32 %v595_v23 }
 0x1c5   : > { %v662_v24 = vpop.eup %661 }
 0x1c6   : > { %v479_v25 = vadd.f32 1.0, %v662_v24 }
 0x1c8   : > { %663 = vrcp.f32 %v479_v25  ;;  %v491_v29 = vand.u32 2147483648, %v479_v25  ;;  %v489_v31 = vand.u32 2147483647, %v479_v25  ;;  %vm485_vm9 = vweird.f32 %v479_v25 }
 0x1ca   : > { %v492_v33 = vor.u32 1.1754944e-38, %v491_v29  ;;  %vm490_vm12 = vcmp.eq.f32.partialorder %v489_v31, 8.507059e+37 }
 0x1ce   : > { %v664_v26 = vpop.eup %663 }
 0x1cf   : > { %v481_v27 = vmul.f32 %v664_v26, %v479_v25  ;;  %vm486_vm8 = vweird.f32 %v664_v26 }
 0x1d0   : > { %vm487_vm10 = vmor %vm485_vm9, %vm486_vm8 }
 0x1d1   : > { %v482_v28 = vsub.f32 1.0, %v481_v27 }
 0x1d3   : > { %v483_v30 = vmul.f32 %v664_v26, %v482_v28 }
 0x1d5   : > { %v484_v32 = vadd.f32 %v664_v26, %v483_v30 }
 0x1d7   : > { %v488_v34 = vsel %vm487_vm10, %v664_v26, %v484_v32 }
 0x1d8   : > { %v493_v35 = vsel %vm490_vm12, %v492_v33, %v488_v34 }
 0x1d9   : > { %v496_v36 = vrot.slane %v493_v35, 1  ;;  %v497_v37 = vrot.slane %v493_v35, 2  ;;  %v498_v38 = vrot.slane %v493_v35, 3  ;;  %503 = vst.msk [vmem:[%s263_s15] sm:$0x1] %vm502_vm11, %v493_v35 }
 0x1db   : > { %504 = vst.msk [vmem:[%s263_s15 + $0x1] sm:$0x1] %vm502_vm11, %v496_v36 }
 0x1dc   : > { %505 = vst.msk [vmem:[%s263_s15 + $0x2] sm:$0x1] %vm502_vm11, %v497_v37 }
 0x1dd   : > { %506 = vst.msk [vmem:[%s263_s15 + $0x3] sm:$0x1] %vm502_vm11, %v498_v38 }
 0x1de PF: > { %s18_s23 = sadd.s32 1, %s745_s23   ;;  %s915_s18 = smov %s729_s19 }
 0x1df   : > { %p15_p0 = scmp.ge.s32.totalorder %s18_s23, 6   ;;  %s916_s19 = smov %s733_s20 }
 0x1e0   : > { %s917_s20 = smov %s830_s30  ;;  %s918_s21 = smov %s741_s22 }
 0x1e1   : > { %s919_s22 = smov %s921_s25  ;;  %17 = sbr.rel (!%p15_p0) target bundleno = 4 (0x4), region = 94 }
 0x1e6   :  { %527 = vsyncpa [#allocation5], 1 }
 0x1e7   :  { %529 = vsyncpa [#allocation5 + $0x1], 1 }

</bundles_post_ra>
